<compile_context>
chip_gen: v7x
topology: tpu7x:2x2x1
jax: 0.10.0
libtpu: 0.0.40
codegen_flags: <defaults>
</compile_context>

<pallas_src>
import math
import functools

import jax
import jax.numpy as jnp
from jax.experimental import pallas as pl
from jax.experimental.pallas import tpu as pltpu


# ----------------------------------------------------------------------------
# Kernel
# ----------------------------------------------------------------------------
def _diag_gaussian_kernel(x_ref, w_ref, b_ref, mean_ref, std_ref, *,
                          p, min_logstd, max_logstd):
    # x_ref:    (TB, D_in)
    # w_ref:    (D_in, 2P) = [W_mean_pad | W_logstd_pad]   (P = 128-lane multiple)
    # b_ref:    (1, 2P)
    # mean_ref: (TB, P)    lane-dense
    # std_ref:  (TB, P)    lane-dense
    y = jnp.dot(x_ref[...], w_ref[...], preferred_element_type=jnp.float32)
    y = y + b_ref[...].astype(jnp.float32)

    # Mean head: lanes [0, P)  -> pass through (128-aligned slice, no select).
    mean_ref[...] = y[:, :p].astype(mean_ref.dtype)

    # Std head: lanes [P, 2P) -> clamp then exp (EUP work only on std lanes).
    s = jnp.clip(y[:, p:], jnp.float32(min_logstd), jnp.float32(max_logstd))
    std_ref[...] = jnp.exp(s).astype(std_ref.dtype)


# ----------------------------------------------------------------------------
# Parameter preparation (hoisted out of the per-forward path)
# ----------------------------------------------------------------------------
def prepare_diag_gaussian_params(w_mean, b_mean, w_logstd, b_logstd):
    """Fuse + pad the two linear heads once, at parameter-construction time.

    w_mean / w_logstd: (D_in, D_out)   (transposed nn.Linear weight)
    b_mean / b_logstd: (1, D_out)
    Returns (w_fused (D_in, 2P), b_fused (1, 2P), d_out) with P = 128-lane pad.
    """
    d_in, d_out = w_mean.shape
    p = max(128, ((d_out + 127) // 128) * 128)

    def pad_cols(a):
        a = a.reshape(a.shape[0] if a.ndim == 2 else 1, -1)
        return jnp.pad(a, ((0, 0), (0, p - a.shape[1])))

    w_fused = jnp.concatenate([pad_cols(w_mean), pad_cols(w_logstd)], axis=1)
    b_fused = jnp.concatenate([pad_cols(b_mean), pad_cols(b_logstd)], axis=1)
    return w_fused, b_fused, d_out


# ----------------------------------------------------------------------------
# Tiling helpers
# ----------------------------------------------------------------------------
def _vmem_capacity_bytes():
    try:
        return int(pltpu.get_tpu_info().vmem_capacity_bytes)
    except Exception:
        return 64 * 1024 * 1024  # conservative (v7x per-TC VMEM)


def _sublane_multiple(dtype):
    # minimum sublane tile is dtype dependent: f32 -> 8, bf16 -> 16, int8/fp8 -> 32
    return {4: 8, 2: 16, 1: 32}.get(jnp.dtype(dtype).itemsize, 8)


def _pick_batch_tile(batch, d_in, p, dtype, budget_bytes, max_block_rows):
    item = jnp.dtype(dtype).itemsize
    sub = _sublane_multiple(dtype)
    if batch <= 2 * sub:
        # Tiny batch: one full-extent tile (full-dim blocks are always legal).
        return batch
    fixed = (d_in * 2 * p + 2 * p) * item                # single-buffered W + b
    per_row = (2 * d_in + 2 * 2 * p) * item              # x dbl-buf + (mean,std) dbl-buf
    avail = max(budget_bytes - fixed, per_row * sub)
    tb = min(max_block_rows, avail // per_row)
    tb = max(sub, (tb // sub) * sub)
    # Keep >= 2 grid tiles so the pipeline (and v7x's 2nd TC) has work.
    half = -(-batch // 2)
    half = -(-half // sub) * sub
    return int(min(tb, half))


# ----------------------------------------------------------------------------
# Forward wrapper
# ----------------------------------------------------------------------------
def diag_gaussian_forward(x, w_fused, b_fused, d_out, *,
                          std_parametrization="exp", min_std=1e-6,
                          max_block_rows=2048, core_parallel=False,
                          return_padded=False):
    """x: (B, D_in); w_fused: (D_in, 2P); b_fused: (1, 2P).  Returns (mean, std)."""
    assert std_parametrization == "exp"
    batch, d_in = x.shape
    two_p = w_fused.shape[1]
    p = two_p // 2
    assert b_fused.shape == (1, two_p)

    min_logstd = float(math.log(min_std))
    max_logstd = float(math.log(math.exp(2.0)))  # == 2.0

    item = jnp.dtype(x.dtype).itemsize
    capacity = _vmem_capacity_bytes()
    budget = capacity // 2                      # headroom for compiler scratch
    tb = _pick_batch_tile(batch, d_in, p, x.dtype, budget, max_block_rows)
    grid = (pl.cdiv(batch, tb),)

    vmem_need = (d_in * two_p + two_p) * item + tb * (2 * d_in + 2 * two_p) * item
    vmem_limit = int(min(capacity - (2 << 20),
                         max(2 * vmem_need, 32 * 1024 * 1024)))

    sem = (pltpu.CORE_PARALLEL,) if core_parallel else (pltpu.PARALLEL,)

    kernel = functools.partial(_diag_gaussian_kernel, p=p,
                               min_logstd=min_logstd, max_logstd=max_logstd)

    cost = pl.CostEstimate(
        flops=2 * batch * d_in * two_p,
        transcendentals=batch * p,
        bytes_accessed=(batch * d_in + d_in * two_p + two_p + 2 * batch * p) * item,
    )

    mean_pad, std_pad = pl.pallas_call(
        kernel,
        out_shape=(jax.ShapeDtypeStruct((batch, p), x.dtype),
                   jax.ShapeDtypeStruct((batch, p), x.dtype)),
        grid_spec=pltpu.PrefetchScalarGridSpec(
            num_scalar_prefetch=0,
            grid=grid,
            in_specs=[
                # x tile: pipelined over the batch.
                pl.BlockSpec((tb, d_in), lambda i: (i, 0)),
                # Fused weight / bias: grid-invariant -> single-buffered.
                pl.BlockSpec((d_in, two_p), lambda i: (0, 0),
                             pipeline_mode=pl.Buffered(1)),
                pl.BlockSpec((1, two_p), lambda i: (0, 0),
                             pipeline_mode=pl.Buffered(1)),
            ],
            out_specs=[
                pl.BlockSpec((tb, p), lambda i: (i, 0)),   # mean (lane-dense)
                pl.BlockSpec((tb, p), lambda i: (i, 0)),   # std  (lane-dense)
            ],
        ),
        compiler_params=pltpu.CompilerParams(
            dimension_semantics=sem,
            vmem_limit_bytes=vmem_limit,
        ),
        cost_estimate=cost,
    )(x, w_fused, b_fused)

    if return_padded:
        # Consumers that tolerate the 128-lane padded slabs avoid the slice traffic.
        return mean_pad, std_pad
    return mean_pad[:, :d_out], std_pad[:, :d_out]


# ----------------------------------------------------------------------------
# Init helper + demo
# ----------------------------------------------------------------------------
def orthogonal_init(key, rows, cols, dtype=jnp.float32):
    # deterministic orthogonal init (mirrors nn.init.orthogonal_, gain=1)
    a = jax.random.normal(key, (max(rows, cols), min(rows, cols)), dtype=jnp.float32)
    q, r = jnp.linalg.qr(a)
    q = q * jnp.sign(jnp.diag(r))[None, :]
    if rows < cols:
        q = q.T
    return q[:rows, :cols].astype(dtype)


if __name__ == "__main__":
    num_inputs, num_outputs, batch = 32, 8, 8
    key = jax.random.PRNGKey(0)
    kx, km, ks, kx2 = jax.random.split(key, 4)

    x = jax.random.normal(kx, (batch, num_inputs), dtype=jnp.float32)

    # PyTorch Linear weight is (out, in); store transposed (in, out).
    w_mean = orthogonal_init(km, num_outputs, num_inputs).T       # (D_in, D_out)
    w_logstd = orthogonal_init(ks, num_outputs, num_inputs).T     # (D_in, D_out)
    b_mean = jnp.zeros((1, num_outputs), dtype=jnp.float32)       # constant_(0)
    b_logstd = jnp.zeros((1, num_outputs), dtype=jnp.float32)

    # One-time parameter preparation (fuse + 128-lane pad), not per forward.
    w_fused, b_fused, d_out = prepare_diag_gaussian_params(
        w_mean, b_mean, w_logstd, b_logstd)

    mean, std = diag_gaussian_forward(x, w_fused, b_fused, d_out)
    jax.block_until_ready((mean, std))

    # reference check in plain JAX
    ref_mean = x @ w_mean + b_mean
    ref_std = jnp.exp(jnp.clip(x @ w_logstd + b_logstd, math.log(1e-6), 2.0))
    assert jnp.allclose(mean, ref_mean, atol=1e-5, rtol=1e-5), "mean mismatch"
    assert jnp.allclose(std, ref_std, atol=1e-5, rtol=1e-5), "std mismatch"

    # Batch not divisible by the tile (partial final tile, masked writeback).
    x2 = jax.random.normal(kx2, (20, num_inputs), dtype=jnp.float32)
    mean2, std2 = diag_gaussian_forward(x2, w_fused, b_fused, d_out)
    jax.block_until_ready((mean2, std2))
    ref_mean2 = x2 @ w_mean + b_mean
    ref_std2 = jnp.exp(jnp.clip(x2 @ w_logstd + b_logstd, math.log(1e-6), 2.0))
    assert jnp.allclose(mean2, ref_mean2, atol=1e-5, rtol=1e-5), "mean mismatch (ragged B)"
    assert jnp.allclose(std2, ref_std2, atol=1e-5, rtol=1e-5), "std mismatch (ragged B)"

    print("KERNEL_OK")
</pallas_src>

<mosaic_0001>
module attributes {stable_mosaic.version = 11 : i64} {
  func.func @_diag_gaussian_kernel(%arg0: i32, %arg1: memref<8x32xf32, #tpu.memory_space<vmem>>, %arg2: memref<32x256xf32, #tpu.memory_space<vmem>>, %arg3: memref<1x256xf32, #tpu.memory_space<vmem>>, %arg4: memref<8x128xf32, #tpu.memory_space<vmem>>, %arg5: memref<8x128xf32, #tpu.memory_space<vmem>>) attributes {dimension_semantics = [#tpu.dimension_semantics<parallel>], iteration_bounds = array<i64: 1>, scalar_prefetch = 0 : i64, scratch_operands = 0 : i64, tpu.core_type = #tpu.core_type<tc>, window_params = [{transform_indices = @transform_0, window_bounds = array<i64: 8, 32>}, {pipeline_mode = #tpu.pipeline_mode<synchronous>, transform_indices = @transform_1, window_bounds = array<i64: 32, 256>}, {pipeline_mode = #tpu.pipeline_mode<synchronous>, transform_indices = @transform_2, window_bounds = array<i64: 1, 256>}, {transform_indices = @transform_3, window_bounds = array<i64: 8, 128>}, {transform_indices = @transform_4, window_bounds = array<i64: 8, 128>}]} {
    %c0 = arith.constant 0 : index
    %c0_0 = arith.constant 0 : index
    %0 = vector.load %arg1[%c0, %c0_0] : memref<8x32xf32, #tpu.memory_space<vmem>>, vector<8x32xf32>
    %c0_1 = arith.constant 0 : index
    %c0_2 = arith.constant 0 : index
    %1 = vector.load %arg2[%c0_1, %c0_2] : memref<32x256xf32, #tpu.memory_space<vmem>>, vector<32x256xf32>
    %cst = arith.constant dense<0.000000e+00> : vector<8x256xf32>
    %2 = tpu.matmul %0, %1, %cst {dimension_numbers = #tpu.dot_dimension_numbers<[1], [0], [0], [1], [0, 0, 1, 1], [], []>} : vector<8x32xf32>, vector<32x256xf32>, vector<8x256xf32> -> vector<8x256xf32>
    %c0_3 = arith.constant 0 : index
    %c0_4 = arith.constant 0 : index
    %3 = vector.load %arg3[%c0_3, %c0_4] : memref<1x256xf32, #tpu.memory_space<vmem>>, vector<1x256xf32>
    %4 = vector.broadcast %3 : vector<1x256xf32> to vector<8x256xf32>
    %5 = arith.addf %2, %4 : vector<8x256xf32>
    %6 = vector.extract_strided_slice %5 {offsets = [0, 0], sizes = [8, 128], strides = [1, 1]} : vector<8x256xf32> to vector<8x128xf32>
    %c0_5 = arith.constant 0 : index
    %c0_6 = arith.constant 0 : index
    %7 = vector.load %arg4[%c0_5, %c0_6] : memref<8x128xf32, #tpu.memory_space<vmem>>, vector<8x128xf32>
    tpu.vector_store %arg4[%c0_5, %c0_6], %6 {strides = array<i32>} : memref<8x128xf32, #tpu.memory_space<vmem>>, vector<8x128xf32>,
    %8 = vector.extract_strided_slice %5 {offsets = [0, 128], sizes = [8, 128], strides = [1, 1]} : vector<8x256xf32> to vector<8x128xf32>
    %cst_7 = arith.constant -13.8155107 : f32
    %cst_8 = arith.constant 2.000000e+00 : f32
    %9 = vector.broadcast %cst_7 : f32 to vector<8x128xf32>
    %10 = arith.maximumf %9, %8 : vector<8x128xf32>
    %11 = vector.broadcast %cst_8 : f32 to vector<8x128xf32>
    %12 = arith.minimumf %11, %10 : vector<8x128xf32>
    %13 = math.exp %12 : vector<8x128xf32>
    %c0_9 = arith.constant 0 : index
    %c0_10 = arith.constant 0 : index
    %14 = vector.load %arg5[%c0_9, %c0_10] : memref<8x128xf32, #tpu.memory_space<vmem>>, vector<8x128xf32>
    tpu.vector_store %arg5[%c0_9, %c0_10], %13 {strides = array<i32>} : memref<8x128xf32, #tpu.memory_space<vmem>>, vector<8x128xf32>,
    return
  }
  func.func @transform_0(%arg0: i32) -> (i32, i32) {
    %c0_i32 = arith.constant 0 : i32
    %c0_i32_0 = arith.constant 0 : i32
    return %arg0, %c0_i32 : i32, i32
  }
  func.func @transform_1(%arg0: i32) -> (i32, i32) {
    %c0_i32 = arith.constant 0 : i32
    %c0_i32_0 = arith.constant 0 : i32
    %c0_i32_1 = arith.constant 0 : i32
    return %c0_i32, %c0_i32_0 : i32, i32
  }
  func.func @transform_2(%arg0: i32) -> (i32, i32) {
    %c0_i32 = arith.constant 0 : i32
    %c0_i32_0 = arith.constant 0 : i32
    %c0_i32_1 = arith.constant 0 : i32
    return %c0_i32, %c0_i32_0 : i32, i32
  }
  func.func @transform_3(%arg0: i32) -> (i32, i32) {
    %c0_i32 = arith.constant 0 : i32
    %c0_i32_0 = arith.constant 0 : i32
    return %arg0, %c0_i32 : i32, i32
  }
  func.func @transform_4(%arg0: i32) -> (i32, i32) {
    %c0_i32 = arith.constant 0 : i32
    %c0_i32_0 = arith.constant 0 : i32
    return %arg0, %c0_i32 : i32, i32
  }
}

</mosaic_0001>

<bundles_post_ra>
// kernel: tpu_custom_call.1
= control target key start
LH: loop header
LB: loop body
LE: loop exit
PB: predicated region body
PF: predicated region fallthrough
CT: control target
= control target key end

     0   :  { %10 = vsyncpa [#allocation3], 0  ;;  %s380_s0 = inlined_call_operand.hbm [shape: f32[8,32], index: 0, kind: input, shape index: {}]   ;;  %s381_s1 = inlined_call_operand.hbm [shape: f32[32,256], index: 1, kind: input, shape index: {}]   ;;  %s382_s2 = inlined_call_operand.vmem [shape: f32[1,256], index: 2, kind: input, shape index: {}]   ;;  %s383_s3 = inlined_call_operand.hbm [shape: f32[8,128], index: 3, kind: output, shape index: {0}]   ;;  %s384_s4 = inlined_call_operand.hbm [shape: f32[8,128], index: 4, kind: output, shape index: {1}]  }
   0x1   :  { %11 = vsyncpa [#allocation6], 0 }
   0x2   :  { %12 = vsyncpa [#allocation4], 0 }
   0x3   :  { %13 = vsyncpa [#allocation9], 0  ;;  %s290_s15 = smov [#allocation2]   ;;  %s291_s17 = smov [#allocation5]  }
   0x4   :  { %s20_s16 = sshll.u32 %s290_s15, 4  ;;  %s29_s18 = sshll.u32 %s291_s17, 4  ;;  %s21_s16 = int_to_ptr.vmem [resolvable:$true] %s20_s16  ;;  %s322_s18 = int_to_ptr.vmem [resolvable:$true] %s29_s18 }
   0x5   :  { %s194_s21 = scalar_lea.hbm %s380_s0, 128 }
   0x6   :  { %p195_p0 = scmp.ne.s32.totalorder %s380_s0, %s194_s21  ;;  %p198_p1 = scmp.lt.u32.totalorder %s194_s21, %s380_s0 }
   0x8   :  { %p200_p2 = pnand %p198_p1, %p195_p0 }
   0xa   :  { %203 = shalt.err (!%p200_p2)
}
   0xb   :  { %s204_s26 = scalar_lea.vmem %s21_s16, 128  ;;  %p209_p4 = scmp.lt.s32.totalorder %s21_s16, %s21_s16 }
   0xc   :  { %p205_p3 = scmp.ne.s32.totalorder %s21_s16, %s204_s26  ;;  %p210_p5 = scmp.lt.s32.totalorder %s204_s26, %s204_s26 }
   0xe   :  { %p211_p6 = por %p210_p5, %p209_p4 }
  0x10   :  { %p212_p7 = pnand %p211_p6, %p205_p3 }
  0x12   :  { %215 = shalt.err (!%p212_p7)
}
  0x13   :  { %23 = dma.hbm_to_vmem [thread:$0]  %s380_s0, 128, %s21_s16, [#allocation3]  }
  0x14   :  { %s216_s5 = scalar_lea.hbm %s381_s1, 1024 }
  0x15   :  { %p217_p8 = scmp.ne.s32.totalorder %s381_s1, %s216_s5  ;;  %p220_p9 = scmp.lt.u32.totalorder %s216_s5, %s381_s1 }
  0x17   :  { %p222_p10 = pnand %p220_p9, %p217_p8 }
  0x19   :  { %225 = shalt.err (!%p222_p10)
}
  0x1a   :  { %s226_s10 = scalar_lea.vmem %s322_s18, 1024  ;;  %p231_p12 = scmp.lt.s32.totalorder %s322_s18, %s322_s18 }
  0x1b   :  { %p227_p11 = scmp.ne.s32.totalorder %s322_s18, %s226_s10  ;;  %p232_p13 = scmp.lt.s32.totalorder %s226_s10, %s226_s10 }
  0x1d   :  { %p233_p0 = por %p232_p13, %p231_p12 }
  0x1f   :  { %p234_p1 = pnand %p233_p0, %p227_p11 }
  0x21   :  { %237 = shalt.err (!%p234_p1)
}
  0x22   :  { %s292_s0 = smov 256   ;;  %s293_s11 = smov 16  }
  0x23   :  { %35 = dma.hbm_to_vmem [thread:$0]  %s381_s1, 1024, %s322_s18, [#allocation6], %s292_s0, %s292_s0, %s293_s11  }
  0x24   :  { %282 = dma.done.wait [#allocation3], 128  }
  0x25   :  { %283 = vsyncadd [#allocation3], 4294967168 }
  0x26   :  { %284 = dma.done.wait [#allocation6], 1024  }
  0x27   :  { %285 = vsyncadd [#allocation6], 4294966272  ;;  %v294_v0 = vmov 0.0   ;;  %v46_v1 = vld [vmem:[#allocation5 + $0x8] sm:$0xff]  ;;  %v48_v2 = vld [vmem:[#allocation5 + $0x18] sm:$0xff]  ;;  %vm65_vm0 = vcmask 261120   ;;  %v55_v14 = vlaneseq }
  0x28   :  { %133 = vmatprep.mubr.f32.mxu0 %v294_v0  ;;  %v45_v3 = vld [vmem:[#allocation5] sm:$0xff]  ;;  %v177_v4 = vpack.c.bf16 %v48_v2, %v46_v1  ;;  %v47_v5 = vld [vmem:[#allocation5 + $0x10] sm:$0xff]  ;;  %v50_v6 = vld [vmem:[#allocation5 + $0x28] sm:$0xff]  ;;  %s295_s15 = smov [#allocation7]  }
  0x29   :  { %v52_v7 = vld [vmem:[#allocation5 + $0x38] sm:$0xff]  ;;  %v179_v8 = vpack.c.bf16 %v47_v5, %v45_v3  ;;  %v49_v10 = vld [vmem:[#allocation5 + $0x20] sm:$0xff]  ;;  %v51_v11 = vld [vmem:[#allocation5 + $0x30] sm:$0xff]  ;;  %v56_v15 = vshrl.u32 %v55_v14, 7  ;;  %s152_s16 = sshll.u32 %s295_s15, 4  ;;  %s153_s16 = int_to_ptr.vmem [resolvable:$true] %s152_s16 }
  0x2a   :  { %v181_v9 = vpack.c.bf16 %v52_v7, %v50_v6  ;;  %178 = vmatprep.subr.bf16.mxu0 %v177_v4  ;;  %v183_v12 = vpack.c.bf16 %v51_v11, %v49_v10  ;;  %v44_v13 = vld [vmem:[#allocation2] sm:$0xff]  ;;  %s238_s17 = scalar_lea.vmem %s153_s16, 128  ;;  %p243_p3 = scmp.lt.s32.totalorder %s153_s16, %s153_s16 }
  0x2b   :  { %180 = vmatpush1.bf16.msra.mxu0 %v179_v8  ;;  %v57_v16 = vsub.s32 0, %v56_v15  ;;  %v53_v17 = vld [vmem:[%s382_s2] sm:$0x3]  ;;  %v61_v18 = vsub.s32 1, %v56_v15  ;;  %p239_p2 = scmp.ne.s32.totalorder %s153_s16, %s238_s17  ;;  %p244_p4 = scmp.lt.s32.totalorder %s238_s17, %s238_s17 }
  0x2c   :  { %182 = vmatprep.subr.bf16.mxu0 %v181_v9 }
  0x2d   :  { %v58_v19 = vrot.slane %v53_v17, %v57_v16  ;;  %v62_v20 = vrot.slane %v53_v17, %v61_v18  ;;  %p245_p5 = por %p244_p4, %p243_p3 }
  0x2f   :  { %184 = vmatpush1.bf16.msra.mxu0 %v183_v12  ;;  %p246_p6 = pnand %p245_p5, %p239_p2 }
  0x32   :  { %176 = vmatmul.mubr.msk.f32.vlgmr.msra.gmra.mrb[0].mxu0 %vm65_vm0, %v44_v13 }
 0x105   :  { %v135_v21 = vpop.f32.mrb[0].mxu0 }
 0x106   :  { %v136_v22 = vadd.f32 %v135_v21, %v58_v19  ;;  %v137_v23 = vpop.f32.mrb[1].mxu0 }
 0x107   :  { %v138_v24 = vadd.f32 %v137_v23, %v62_v20 }
 0x108   :  { %140 = vst [vmem:[#allocation7] sm:$0xff] %v136_v22 }
 0x109   :  { %v141_v25 = vmax.f32 %v138_v24, -13.815511 }
 0x10a   :  { %249 = shalt.err (!%p246_p6)
}
 0x10b   :  { %s250_s19 = scalar_lea.hbm %s383_s3, 128 }
 0x10c   :  { %p251_p7 = scmp.ne.s32.totalorder %s383_s3, %s250_s19  ;;  %p254_p8 = scmp.lt.u32.totalorder %s250_s19, %s383_s3 }
 0x10e   :  { %p256_p9 = pnand %p254_p8, %p251_p7 }
 0x110   :  { %259 = shalt.err (!%p256_p9)
}
 0x111   :  { %155 = dma.vmem_to_hbm [thread:$0]  %s153_s16, 128, %s383_s3, [#allocation4]   ;;  %v142_v26 = vmin.f32 %v141_v25, 2.0 }
 0x112   :  { %s296_s26 = smov [#allocation8]  }
 0x113   :  { %v143_v27 = vmul.f32 1.442695, %v142_v26  ;;  %s162_s27 = sshll.u32 %s296_s26, 4  ;;  %s163_s27 = int_to_ptr.vmem [resolvable:$true] %s162_s27 }
 0x114   :  { %s260_s28 = scalar_lea.vmem %s163_s27, 128  ;;  %p265_p11 = scmp.lt.s32.totalorder %s163_s27, %s163_s27 }
 0x115   :  { %192 = vpow2.f32 %v143_v27  ;;  %p261_p10 = scmp.ne.s32.totalorder %s163_s27, %s260_s28  ;;  %p266_p12 = scmp.lt.s32.totalorder %s260_s28, %s260_s28 }
 0x117   :  { %p267_p13 = por %p266_p12, %p265_p11 }
 0x119   :  { %p268_p0 = pnand %p267_p13, %p261_p10 }
 0x11f   :  { %v193_v28 = vpop.eup %192 }
 0x120   :  { %145 = vst [vmem:[#allocation8] sm:$0xff] %v193_v28 }
 0x121   :  { %271 = shalt.err (!%p268_p0)
}
 0x122   :  { %s272_s5 = scalar_lea.hbm %s384_s4, 128 }
 0x123   :  { %p273_p1 = scmp.ne.s32.totalorder %s384_s4, %s272_s5  ;;  %p276_p2 = scmp.lt.u32.totalorder %s272_s5, %s384_s4 }
 0x125   :  { %p278_p3 = pnand %p276_p2, %p273_p1 }
 0x127   :  { %281 = shalt.err (!%p278_p3)
}
 0x128   :  { %165 = dma.vmem_to_hbm [thread:$0]  %s163_s27, 128, %s384_s4, [#allocation9]  }
 0x129   :  { %286 = dma.done.wait [#allocation4], 128  }
 0x12a   :  { %287 = vsyncadd [#allocation4], 4294967168 }
 0x12b   :  { %288 = dma.done.wait [#allocation9], 128  }
 0x12c   :  { %289 = vsyncadd [#allocation9], 4294967168 }
 0x12d   :  { %172 = vsyncpa [#allocation3], 1 }
 0x12e   :  { %173 = vsyncpa [#allocation6], 1 }
 0x12f   :  { %174 = vsyncpa [#allocation4], 1 }
 0x130   :  { %175 = vsyncpa [#allocation9], 1 }

</bundles_post_ra>
